<compile_context>
chip_gen: v7x
topology: tpu7x:2x2x1
jax: 0.10.0
libtpu: 0.0.40
codegen_flags: <defaults>
</compile_context>

<pallas_src>
import functools

import jax
import jax.numpy as jnp
from jax.experimental import pallas as pl
from jax.experimental.pallas import tpu as pltpu


def _round_up(x, m):
    return (x + m - 1) // m * m


def _graphsage_kernel(feats_ref, adj_ref, w_enc_ref, w_cls_ref, out_ref,
                      agg_ref, *, deg_col):
    """One (row-tile i, neighbor-tile k) grid step.

    feats_ref : (tk, Fp)  bf16  neighbor features for this k chunk (col deg_col == 1.0)
    adj_ref   : (tm, tk)  int8  adjacency tile (rows = output nodes, cols = neighbors)
    w_enc_ref : (Fp, Hp)  bf16  encoder weight (resident; rows >= F are zero)
    w_cls_ref : (Hp, Cp)  bf16  classifier weight, pre-transposed + lane-padded
    out_ref   : (tm, Cp)  f32   logits for this row tile (resident across k)
    agg_ref   : (tm, Fp)  f32   neighbor-sum (+degree) accumulator (scratch)
    """
    k = pl.program_id(1)

    @pl.when(k == 0)
    def _init():
        agg_ref[...] = jnp.zeros_like(agg_ref)

    # int8 adjacency in HBM/VMEM -> widen on the VPU (hidden under the DMA wait).
    adj_blk = adj_ref[...].astype(jnp.float32).astype(jnp.bfloat16)

    # Dominant matmul: bf16 MXU inputs, f32 accumulation across k chunks.  The ones
    # column at feats[:, deg_col] makes this same matmul accumulate the row degree
    # into agg_ref[:, deg_col] for free (exact integer counts in f32).
    agg_ref[...] += jnp.dot(adj_blk, feats_ref[...],
                            preferred_element_type=jnp.float32)

    @pl.when(k == pl.num_programs(1) - 1)
    def _finalize():
        agg = agg_ref[...]
        deg = agg[:, deg_col:deg_col + 1]                            # row degree
        inv_deg = pl.reciprocal(jnp.maximum(deg, 1.0), approx=True)  # EUP, ~free
        agg_n = (agg * inv_deg).astype(jnp.bfloat16)                 # mean aggregation
        embeds = jnp.maximum(
            jnp.dot(agg_n, w_enc_ref[...], preferred_element_type=jnp.float32),
            0.0)
        # Classifier: weight already transposed on host -> no in-kernel .T.
        out_ref[...] = jnp.dot(embeds.astype(jnp.bfloat16), w_cls_ref[...],
                               preferred_element_type=jnp.float32)


@functools.partial(jax.jit, static_argnames=("tm", "tk"))
def supervised_graphsage(feats, adj, w_enc, w_cls, *, tm=512, tk=1024):
    N, F = feats.shape
    C, H = w_cls.shape
    assert adj.shape == (N, N)
    assert w_enc.shape == (F, H)

    # ---- tile selection ---------------------------------------------------
    # Clamp to the padded problem size; keep >= 2 row tiles whenever possible so
    # the "parallel" i axis can split across both v7x TensorCores.
    tm = min(tm, _round_up(N, 128))
    tk = min(tk, _round_up(N, 128))
    while tm > 128 and _round_up(N, tm) // tm < 2:
        tm //= 2

    Nr = _round_up(N, tm)          # padded output-node rows
    Nc = _round_up(N, tk)          # padded neighbor / contraction dim
    Fp = _round_up(F + 1, 128)     # +1 leaves room for the degree ones-column
    Hp = _round_up(H, 128)
    Cp = _round_up(C, 128)         # lane-dense output

    bf16 = jnp.bfloat16
    adj_p = jnp.pad(adj, ((0, Nr - N), (0, Nc - N))).astype(jnp.int8)   # binary -> int8
    feats_p = jnp.pad(feats, ((0, Nc - N), (0, Fp - F)))
    feats_p = feats_p.at[:N, F].set(1.0).astype(bf16)  # degree column (padded rows stay 0)
    w_enc_p = jnp.pad(w_enc, ((0, Fp - F), (0, Hp - H))).astype(bf16)   # rows F..Fp zero
    w_cls_t = jnp.pad(w_cls.T, ((0, Hp - H), (0, Cp - C))).astype(bf16)  # [Hp, Cp]

    grid = (Nr // tm, Nc // tk)

    # ---- VMEM budget: double-buffered inputs/output + f32 scratch ----------
    vmem_need = (2 * (tm * tk * 1          # adj tile (int8)
                      + tk * Fp * 2        # feats tile (bf16)
                      + Fp * Hp * 2        # w_enc (resident)
                      + Hp * Cp * 2        # w_cls^T (resident)
                      + tm * Cp * 4)       # out tile (f32)
                 + tm * Fp * 4)            # accumulator scratch
    vmem_limit = min(vmem_need + (8 << 20), 60 << 20)   # headroom; < v7x 64 MiB/TC

    flops = 2 * Nr * Nc * Fp + 2 * Nr * Fp * Hp + 2 * Nr * Hp * Cp
    bytes_accessed = (adj_p.size * 1 + grid[0] * feats_p.size * 2
                      + w_enc_p.size * 2 + w_cls_t.size * 2 + Nr * Cp * 4)

    kernel = functools.partial(_graphsage_kernel, deg_col=F)

    out_p = pl.pallas_call(
        kernel,
        out_shape=jax.ShapeDtypeStruct((Nr, Cp), jnp.float32),
        grid_spec=pltpu.PrefetchScalarGridSpec(
            num_scalar_prefetch=0,
            grid=grid,
            in_specs=[
                pl.BlockSpec((tk, Fp), lambda i, k: (k, 0)),   # feats (k-tiled)
                pl.BlockSpec((tm, tk), lambda i, k: (i, k)),   # adj   (i,k tiled, int8)
                pl.BlockSpec((Fp, Hp), lambda i, k: (0, 0)),   # w_enc (resident)
                pl.BlockSpec((Hp, Cp), lambda i, k: (0, 0)),   # w_cls^T (resident)
            ],
            out_specs=pl.BlockSpec((tm, Cp), lambda i, k: (i, 0)),
            scratch_shapes=[
                pltpu.VMEM((tm, Fp), jnp.float32),             # sum (+degree) accumulator
            ],
        ),
        compiler_params=pltpu.CompilerParams(
            dimension_semantics=("parallel", "arbitrary"),
            vmem_limit_bytes=int(vmem_limit),
        ),
        cost_estimate=pl.CostEstimate(flops=int(flops), transcendentals=int(Nr),
                                      bytes_accessed=int(bytes_accessed)),
    )(feats_p, adj_p, w_enc_p, w_cls_t)

    return out_p[:N, :C]


# ---------------------------------------------------------------------------
# References
# ---------------------------------------------------------------------------
def _bf(x):
    return x.astype(jnp.bfloat16).astype(jnp.float32)


def reference_bf16(feats, adj, w_enc, w_cls):
    """Mirror of the kernel numerics (bf16 MXU inputs, f32 accumulation)."""
    hp = jax.lax.Precision.HIGHEST
    adj_b, feats_b = _bf(adj), _bf(feats)
    w_enc_b, w_cls_b = _bf(w_enc), _bf(w_cls)
    deg = jnp.maximum(jnp.sum(adj_b, axis=-1, keepdims=True), 1.0)
    agg = _bf(jnp.dot(adj_b, feats_b, precision=hp) * (1.0 / deg))
    embeds = jnp.maximum(jnp.dot(agg, w_enc_b, precision=hp), 0.0)
    return jnp.dot(_bf(embeds), w_cls_b.T, precision=hp)


def reference_f32(feats, adj, w_enc, w_cls):
    """Full-precision forward semantics of the original module."""
    deg = jnp.maximum(jnp.sum(adj, axis=-1, keepdims=True), 1.0)
    agg = (adj @ feats) / deg
    embeds = jnp.maximum(agg @ w_enc, 0.0)
    return embeds @ w_cls.T


if __name__ == "__main__":
    # Small, deliberately non-aligned shapes so the padding path is exercised:
    # 200 nodes, 96 raw features, 64-dim embeddings, 7 classes.
    N, F, H, C = 200, 96, 64, 7

    key = jax.random.PRNGKey(0)
    k_feat, k_adj, k_enc, k_cls = jax.random.split(key, 4)

    feats = jax.random.normal(k_feat, (N, F), dtype=jnp.float32)
    adj = (jax.random.uniform(k_adj, (N, N)) < 0.4).astype(jnp.float32)
    adj = jnp.maximum(adj, jnp.eye(N, dtype=jnp.float32))   # self-loops -> nonzero degree
    w_enc = jax.random.normal(k_enc, (F, H), dtype=jnp.float32) * 0.1
    w_cls = jax.random.normal(k_cls, (C, H), dtype=jnp.float32) * 0.1

    # tm=tk=128 so the (row, neighbor) grid is genuinely multi-step at this small size.
    out = jax.block_until_ready(
        supervised_graphsage(feats, adj, w_enc, w_cls, tm=128, tk=128))

    ref_mirror = reference_bf16(feats, adj, w_enc, w_cls)   # tight: same bf16 numerics
    ref_full = reference_f32(feats, adj, w_enc, w_cls)      # loose: module semantics

    assert out.shape == (N, C)
    # atol slightly looser than before to cover the approx=True reciprocal (error
    # well below bf16 ulp, but the mirror models an exact reciprocal).
    assert jnp.allclose(out, ref_mirror, atol=4e-3, rtol=1e-2), (
        float(jnp.max(jnp.abs(out - ref_mirror))))
    assert jnp.allclose(out, ref_full, atol=2.5e-2, rtol=2e-2), (
        float(jnp.max(jnp.abs(out - ref_full))))
    print("KERNEL_OK")
</pallas_src>

<mosaic_0001>
module attributes {stable_mosaic.version = 11 : i64} {
  func.func @_graphsage_kernel(%arg0: i32, %arg1: i32, %arg2: memref<128x128xbf16, #tpu.memory_space<vmem>>, %arg3: memref<128x128xi8, #tpu.memory_space<vmem>>, %arg4: memref<128x128xbf16, #tpu.memory_space<vmem>>, %arg5: memref<128x128xbf16, #tpu.memory_space<vmem>>, %arg6: memref<128x128xf32, #tpu.memory_space<vmem>>, %arg7: memref<128x128xf32, #tpu.memory_space<vmem>>) attributes {dimension_semantics = [#tpu.dimension_semantics<parallel>, #tpu.dimension_semantics<arbitrary>], iteration_bounds = array<i64: 2, 2>, scalar_prefetch = 0 : i64, scratch_operands = 1 : i64, tpu.core_type = #tpu.core_type<tc>, window_params = [{transform_indices = @transform_0, window_bounds = array<i64: 128, 128>}, {transform_indices = @transform_1, window_bounds = array<i64: 128, 128>}, {pipeline_mode = #tpu.pipeline_mode<synchronous>, transform_indices = @transform_2, window_bounds = array<i64: 128, 128>}, {pipeline_mode = #tpu.pipeline_mode<synchronous>, transform_indices = @transform_3, window_bounds = array<i64: 128, 128>}, {transform_indices = @transform_4, window_bounds = array<i64: 128, 128>}]} {
    %c0_i32 = arith.constant 0 : i32
    %0 = arith.cmpi eq, %arg1, %c0_i32 : i32
    %1 = arith.extui %0 : i1 to i32
    %c0_i32_0 = arith.constant 0 : i32
    %2 = arith.cmpi ne, %1, %c0_i32_0 : i32
    scf.if %2 {
      %cst_9 = arith.constant 0.000000e+00 : f32
      %14 = vector.broadcast %cst_9 : f32 to vector<128x128xf32>
      %c0_10 = arith.constant 0 : index
      %c0_11 = arith.constant 0 : index
      %15 = vector.load %arg7[%c0_10, %c0_11] : memref<128x128xf32, #tpu.memory_space<vmem>>, vector<128x128xf32>
      tpu.vector_store %arg7[%c0_10, %c0_11], %14 {strides = array<i32>} : memref<128x128xf32, #tpu.memory_space<vmem>>, vector<128x128xf32>,
    } else {
    }
    %c0 = arith.constant 0 : index
    %c0_1 = arith.constant 0 : index
    %3 = vector.load %arg3[%c0, %c0_1] : memref<128x128xi8, #tpu.memory_space<vmem>>, vector<128x128xi8>
    %4 = arith.sitofp %3 : vector<128x128xi8> to vector<128x128xf32>
    %5 = arith.truncf %4 : vector<128x128xf32> to vector<128x128xbf16>
    %c0_2 = arith.constant 0 : index
    %c0_3 = arith.constant 0 : index
    %6 = vector.load %arg7[%c0_2, %c0_3] : memref<128x128xf32, #tpu.memory_space<vmem>>, vector<128x128xf32>
    %c0_4 = arith.constant 0 : index
    %c0_5 = arith.constant 0 : index
    %7 = vector.load %arg2[%c0_4, %c0_5] : memref<128x128xbf16, #tpu.memory_space<vmem>>, vector<128x128xbf16>
    %cst = arith.constant dense<0.000000e+00> : vector<128x128xf32>
    %8 = tpu.matmul %5, %7, %cst {dimension_numbers = #tpu.dot_dimension_numbers<[1], [0], [0], [1], [0, 0, 1, 1], [], []>} : vector<128x128xbf16>, vector<128x128xbf16>, vector<128x128xf32> -> vector<128x128xf32>
    %9 = arith.addf %6, %8 : vector<128x128xf32>
    %c0_6 = arith.constant 0 : index
    %c0_7 = arith.constant 0 : index
    %10 = vector.load %arg7[%c0_6, %c0_7] : memref<128x128xf32, #tpu.memory_space<vmem>>, vector<128x128xf32>
    tpu.vector_store %arg7[%c0_6, %c0_7], %9 {strides = array<i32>} : memref<128x128xf32, #tpu.memory_space<vmem>>, vector<128x128xf32>,
    %c1_i32 = arith.constant 1 : i32
    %11 = arith.cmpi eq, %arg1, %c1_i32 : i32
    %12 = arith.extui %11 : i1 to i32
    %c0_i32_8 = arith.constant 0 : i32
    %13 = arith.cmpi ne, %12, %c0_i32_8 : i32
    scf.if %13 {
      %c0_9 = arith.constant 0 : index
      %c0_10 = arith.constant 0 : index
      %14 = vector.load %arg7[%c0_9, %c0_10] : memref<128x128xf32, #tpu.memory_space<vmem>>, vector<128x128xf32>
      %15 = vector.extract_strided_slice %14 {offsets = [0, 96], sizes = [128, 1], strides = [1, 1]} : vector<128x128xf32> to vector<128x1xf32>
      %cst_11 = arith.constant 1.000000e+00 : f32
      %16 = vector.broadcast %cst_11 : f32 to vector<128x1xf32>
      %17 = arith.maximumf %15, %16 : vector<128x1xf32>
      %18 = tpu.reciprocal %17 {approx = true} : vector<128x1xf32> -> vector<128x1xf32>
      %19 = vector.broadcast %18 : vector<128x1xf32> to vector<128x128xf32>
      %20 = arith.mulf %14, %19 : vector<128x128xf32>
      %21 = arith.truncf %20 : vector<128x128xf32> to vector<128x128xbf16>
      %c0_12 = arith.constant 0 : index
      %c0_13 = arith.constant 0 : index
      %22 = vector.load %arg4[%c0_12, %c0_13] : memref<128x128xbf16, #tpu.memory_space<vmem>>, vector<128x128xbf16>
      %cst_14 = arith.constant dense<0.000000e+00> : vector<128x128xf32>
      %23 = tpu.matmul %21, %22, %cst_14 {dimension_numbers = #tpu.dot_dimension_numbers<[1], [0], [0], [1], [0, 0, 1, 1], [], []>} : vector<128x128xbf16>, vector<128x128xbf16>, vector<128x128xf32> -> vector<128x128xf32>
      %cst_15 = arith.constant 0.000000e+00 : f32
      %24 = vector.broadcast %cst_15 : f32 to vector<128x128xf32>
      %25 = arith.maximumf %23, %24 : vector<128x128xf32>
      %26 = arith.truncf %25 : vector<128x128xf32> to vector<128x128xbf16>
      %c0_16 = arith.constant 0 : index
      %c0_17 = arith.constant 0 : index
      %27 = vector.load %arg5[%c0_16, %c0_17] : memref<128x128xbf16, #tpu.memory_space<vmem>>, vector<128x128xbf16>
      %cst_18 = arith.constant dense<0.000000e+00> : vector<128x128xf32>
      %28 = tpu.matmul %26, %27, %cst_18 {dimension_numbers = #tpu.dot_dimension_numbers<[1], [0], [0], [1], [0, 0, 1, 1], [], []>} : vector<128x128xbf16>, vector<128x128xbf16>, vector<128x128xf32> -> vector<128x128xf32>
      %c0_19 = arith.constant 0 : index
      %c0_20 = arith.constant 0 : index
      %29 = vector.load %arg6[%c0_19, %c0_20] : memref<128x128xf32, #tpu.memory_space<vmem>>, vector<128x128xf32>
      tpu.vector_store %arg6[%c0_19, %c0_20], %28 {strides = array<i32>} : memref<128x128xf32, #tpu.memory_space<vmem>>, vector<128x128xf32>,
    } else {
    }
    return
  }
  func.func @transform_0(%arg0: i32, %arg1: i32) -> (i32, i32) {
    %c0_i32 = arith.constant 0 : i32
    %c0_i32_0 = arith.constant 0 : i32
    return %arg1, %c0_i32 : i32, i32
  }
  func.func @transform_1(%arg0: i32, %arg1: i32) -> (i32, i32) {
    %c0_i32 = arith.constant 0 : i32
    return %arg0, %arg1 : i32, i32
  }
  func.func @transform_2(%arg0: i32, %arg1: i32) -> (i32, i32) {
    %c0_i32 = arith.constant 0 : i32
    %c0_i32_0 = arith.constant 0 : i32
    %c0_i32_1 = arith.constant 0 : i32
    return %c0_i32, %c0_i32_0 : i32, i32
  }
  func.func @transform_3(%arg0: i32, %arg1: i32) -> (i32, i32) {
    %c0_i32 = arith.constant 0 : i32
    %c0_i32_0 = arith.constant 0 : i32
    %c0_i32_1 = arith.constant 0 : i32
    return %c0_i32, %c0_i32_0 : i32, i32
  }
  func.func @transform_4(%arg0: i32, %arg1: i32) -> (i32, i32) {
    %c0_i32 = arith.constant 0 : i32
    %c0_i32_0 = arith.constant 0 : i32
    return %arg0, %c0_i32 : i32, i32
  }
}

</mosaic_0001>

<bundles_post_ra>
// kernel: supervised_graphsage.1
= control target key start
LH: loop header
LB: loop body
LE: loop exit
PB: predicated region body
PF: predicated region fallthrough
CT: control target
= control target key end

     0   :  { %s1535_s15 = smov 0   ;;  %s1537_s16 = smov 0   ;;  %s1775_s0 = inlined_call_operand.vmem [shape: bf16[256,128], index: 0, kind: input, shape index: {}]   ;;  %s1776_s1 = inlined_call_operand.vmem [shape: s8[256,256], index: 1, kind: input, shape index: {}]   ;;  %s1777_s2 = inlined_call_operand.vmem [shape: bf16[128,128], index: 2, kind: input, shape index: {}]   ;;  %s1778_s3 = inlined_call_operand.vmem [shape: bf16[128,128], index: 3, kind: input, shape index: {}]   ;;  %s1779_s4 = inlined_call_operand.vmem [shape: f32[256,128], index: 4, kind: output, shape index: {}]  }
   0x1   :  { %s1539_s17 = smov 0   ;;  %s1541_s18 = smov 0  }
   0x2   :  { %s1543_s19 = smov 0   ;;  %s1545_s20 = smov 0  }
   0x3   :  { %s1547_s21 = smov 0  }
   0x4 LB: > { %s23_s22 = sadd.s32 1, %s1498_s19  ;;  %s26_s23 = sadd.s32 1, %s1502_s20  ;;  %s1506_s21 = sphi %s1547_s21, %s14_s21   ;;  %s1502_s20 = sphi %s1545_s20, %s1785_s20   ;;  %s1498_s19 = sphi %s1543_s19, %s1784_s19   ;;  %s1494_s18 = sphi %s1541_s18, %s1783_s18   ;;  %s1490_s17 = sphi %s1539_s17, %s1782_s17   ;;  %s1486_s16 = sphi %s1537_s16, %s1781_s16   ;;  %s1482_s15 = sphi %s1535_s15, %s1780_s15  }
   0x5   : > { %p24_p0 = scmp.ge.s32.totalorder %s23_s22, 2  ;;  %p68_p1 = scmp.ne.s32.totalorder %s1486_s16, %s1482_s15 }
   0x6   : > { %p69_p2 = scmp.eq.s32.totalorder %s1506_s21, 0  ;;  %s61_s27 = sadd.s32 1, %s1486_s16 }
   0x7   : > { %s1787_s22 = smov (%p24_p0, %s23_s22), 0  ;;  %s1789_s23 = smov (!%p24_p0, %s26_s23), %s1502_s20 }
   0x8   : > { %p70_p3 = por %p69_p2, %p68_p1  ;;  %p28_p4 = scmp.ge.s32.totalorder %s1789_s23, 2 }
   0x9   : > { %s57_s24 = ssub.s32 %s1498_s19, %s1787_s22  ;;  %p1136_p6 = scmp.ge.s32.totalorder %s1506_s21, 4 }
   0xa   : > { %s1791_s23 = smov (%p28_p4, %s1789_s23), 0 }
   0xb   : > { %s56_s25 = ssub.s32 %s1502_s20, %s1791_s23  ;;  %168 = sbr.rel (%p1136_p6) target bundleno = 26 (0x1a), region = 24 }
   0xc   : > { %s58_s26 = sor.u32 %s57_s24, %s56_s25 }
   0xd   : > { %p59_p5 = scmp.eq.s32.totalorder %s58_s26, 0 }
   0xf   : > { %s1586_s28 = scalar_select %p59_p5, %s1486_s16, %s61_s27  }
  0x12   : > { %180 = sbr.rel (!%p70_p3) target bundleno = 26 (0x1a), region = 32  ;;  %s182_s29 = sand.u32 (%p70_p3), 1, %s1486_s16  }
  0x13   : > { %s1175_s30 = sshll.u32 (%p70_p3), %s1502_s20, 3  ;;  %s1137_s5 = sshll.u32 (%p70_p3), %s182_s29, 5 }
  0x14   : > { %s187_s6 = sadd.s32 (%p70_p3), %s1498_s19, %s1175_s30  ;;  %s184_s11 = scalar_lea.vmem (%p70_p3), [#allocation3], %s1137_s5 }
  0x15   : > { %s1140_s7 = sshll.u32 (%p70_p3), %s187_s6, 3 }
  0x16   : > { %s189_s10 = scalar_lea.vmem (%p70_p3), %s1776_s1, %s1140_s7 }
  0x17   : > { %v223_v0 = vld [vmem:[%s189_s10] sm:$0xff] (%p70_p3)  ;;  %v225_v1 = vld [vmem:[%s189_s10 + $0x10] sm:$0xff] (%p70_p3) }
  0x18   : > { %v227_v2 = vld [vmem:[%s189_s10 + $0x20] sm:$0xff] (%p70_p3)  ;;  %224 = vst [vmem:[%s184_s11] sm:$0xff] (%p70_p3), %v223_v0  ;;  %226 = vst [vmem:[%s184_s11 + $0x8] sm:$0xff] (%p70_p3), %v225_v1  ;;  %v229_v3 = vld [vmem:[%s189_s10 + $0x30] sm:$0xff] (%p70_p3) }
  0x19   : > { %228 = vst [vmem:[%s184_s11 + $0x10] sm:$0xff] %v227_v2  ;;  %230 = vst [vmem:[%s184_s11 + $0x18] sm:$0xff] %v229_v3 }
  0x1a PF: > { %p1141_p7 = scmp.ge.s32.totalorder %s1506_s21, 1  ;;  %p235_p8 = scmp.lt.s32.totalorder %s1506_s21, 5 }
  0x1c   : > { %p236_p9 = pnand %p1141_p7, %p235_p8 }
  0x1d   : > { %s242_s12 = sand.u32 (!%p236_p9), 1, %s1482_s15   ;;  %s1143_s13 = sshll.u32 (!%p236_p9), %s1490_s17, 4 }
  0x1e   : > { %239 = sbr.rel (%p236_p9) target bundleno = 915 (0x393), region = 70  ;;  %s1142_s14 = sshll.u32 (!%p236_p9), %s242_s12, 5 }
  0x1f   : > { %p273_p10 = scmp.lt.s32.totalorder (!%p236_p9), %s1143_s13, 31  ;;  %s1145_s24 = sshll.u32 (!%p236_p9), %s1494_s18, 4 }
  0x20   : > { %p280_p11 = scmp.lt.s32.totalorder (!%p236_p9), %s1145_s24, 31  ;;  %s1610_s15 = scalar_lea.vmem (!%p236_p9), [#allocation3], %s1142_s14 }
  0x21   : > { %p1147_p12 = scmp.ne.s32.totalorder (!%p236_p9), %s1490_s17, 0 }
  0x25   : > { %s1793_s13 = smov (!%p273_p10, %s1143_s13), 31  ;;  %s1795_s24 = smov (!%p280_p11, %s1145_s24), 31 }
  0x26   : > { %s1144_s25 = sshll.u32 %s1793_s13, 2  ;;  %s1146_s30 = sshll.u32 %s1795_s24, 3  ;;  %v1508_v4 = vmov (!%p1147_p12), 0.0  }
  0x27   : > { %s1603_s29 = scalar_lea.vmem %s1775_s0, %s1144_s25  ;;  %s1608_s7 = scalar_lea.vmem %s1779_s4, %s1146_s30  ;;  %290 = vst [vmem:[#allocation2] sm:$0xff] (!%p1147_p12), %v1508_v4  ;;  %291 = vst [vmem:[#allocation2 + $0x8] sm:$0xff] (!%p1147_p12), %v1508_v4 }
  0x28   : > { %289 = sbr.rel (%p1147_p12) target bundleno = 47 (0x2f), region = 78  ;;  %292 = vst [vmem:[#allocation2 + $0x10] sm:$0xff] (!%p1147_p12), %v1508_v4  ;;  %293 = vst [vmem:[#allocation2 + $0x18] sm:$0xff] (!%p1147_p12), %v1508_v4 }
  0x29   : > { %294 = vst [vmem:[#allocation2 + $0x20] sm:$0xff] (!%p1147_p12), %v1508_v4  ;;  %295 = vst [vmem:[#allocation2 + $0x28] sm:$0xff] (!%p1147_p12), %v1508_v4 }
  0x2a   : > { %296 = vst [vmem:[#allocation2 + $0x30] sm:$0xff] (!%p1147_p12), %v1508_v4  ;;  %297 = vst [vmem:[#allocation2 + $0x38] sm:$0xff] (!%p1147_p12), %v1508_v4 }
  0x2b   : > { %298 = vst [vmem:[#allocation2 + $0x40] sm:$0xff] (!%p1147_p12), %v1508_v4  ;;  %299 = vst [vmem:[#allocation2 + $0x48] sm:$0xff] (!%p1147_p12), %v1508_v4 }
  0x2c   : > { %300 = vst [vmem:[#allocation2 + $0x50] sm:$0xff] (!%p1147_p12), %v1508_v4  ;;  %301 = vst [vmem:[#allocation2 + $0x58] sm:$0xff] (!%p1147_p12), %v1508_v4 }
  0x2d   : > { %302 = vst [vmem:[#allocation2 + $0x60] sm:$0xff] (!%p1147_p12), %v1508_v4  ;;  %303 = vst [vmem:[#allocation2 + $0x68] sm:$0xff] (!%p1147_p12), %v1508_v4 }
  0x2e   : > { %304 = vst [vmem:[#allocation2 + $0x70] sm:$0xff] (!%p1147_p12), %v1508_v4  ;;  %305 = vst [vmem:[#allocation2 + $0x78] sm:$0xff] (!%p1147_p12), %v1508_v4 }
  0x2f PF: > { %v1394_v5 = vld [vmem:[%s1603_s29] sm:$0xff]   ;;  %v1395_v6 = vld [vmem:[%s1603_s29 + $0x8] sm:$0xff]   ;;  %v1396_v7 = vld [vmem:[%s1603_s29 + $0x10] sm:$0xff]   ;;  %p1156_p13 = scmp.ne.s32.totalorder %s1490_s17, 1 }
  0x30   : > { %1224 = vmatprep.subr.bf16.mxu0 %v1394_v5  ;;  %1320 = vmatprep.subr.bf16.mxu1 %v1394_v5  ;;  %v1397_v8 = vld [vmem:[%s1603_s29 + $0x18] sm:$0xff]   ;;  %v306_v9 = vld [vmem:[%s1610_s15] sm:$0xff]  ;;  %v308_v10 = vld [vmem:[%s1610_s15 + $0x10] sm:$0xff] }
  0x31   : > { %1225 = vmatpush3.bf16.msra.mxu0 %v1394_v5  ;;  %1328 = vmatpush3.bf16.msra.mxu1 %v1394_v5  ;;  %v310_v11 = vunpack.c.l.s8.bf16 %v306_v9  ;;  %v314_v12 = vunpack.c.l.s8.bf16 %v308_v10  ;;  %v1398_v13 = vld [vmem:[%s1603_s29 + $0x20] sm:$0xff]   ;;  %v1399_v14 = vld [vmem:[%s1603_s29 + $0x28] sm:$0xff]   ;;  %v1400_v15 = vld [vmem:[%s1603_s29 + $0x30] sm:$0xff]   ;;  %v311_v19 = vunpack.c.h.s8.bf16 %v306_v9  ;;  %v315_v20 = vunpack.c.h.s8.bf16 %v308_v10 }
  0x32   : > { %1226 = vmatprep.subr.bf16.mxu0 %v1395_v6  ;;  %1321 = vmatprep.subr.bf16.mxu1 %v1395_v6  ;;  %v1401_v16 = vld [vmem:[%s1603_s29 + $0x38] sm:$0xff]   ;;  %v307_v17 = vld [vmem:[%s1610_s15 + $0x8] sm:$0xff]  ;;  %v320_v25 = vld [vmem:[#allocation2 + $0x10] sm:$0xff] }
  0x33   : > { %1240 = vmatprep.mubr.bf16.mxu0 %v310_v11  ;;  %1248 = vmatprep.mubr.bf16.mxu1 %v314_v12  ;;  %v309_v18 = vld [vmem:[%s1610_s15 + $0x18] sm:$0xff]  ;;  %v312_v21 = vunpack.c.l.s8.bf16 %v307_v17  ;;  %v313_v23 = vunpack.c.h.s8.bf16 %v307_v17  ;;  %v328_v26 = vld [vmem:[#allocation2 + $0x50] sm:$0xff]  ;;  %v318_v27 = vld [vmem:[#allocation2] sm:$0xff]  ;;  %v1509_v12 = vmov (!%p1156_p13), 96  }
  0x34   : > { %v316_v22 = vunpack.c.l.s8.bf16 %v309_v18  ;;  %v317_v24 = vunpack.c.h.s8.bf16 %v309_v18  ;;  %v326_v28 = vld [vmem:[#allocation2 + $0x40] sm:$0xff]  ;;  %v321_v31 = vld [vmem:[#allocation2 + $0x18] sm:$0xff]  ;;  %v319_v37 = vld [vmem:[#allocation2 + $0x8] sm:$0xff]  ;;  %1403 = vset.pattern.permute.xlu1 (!%p1156_p13), %v1509_v12  ;;  %1402 = vset.pattern.permute.xlu0 (!%p1156_p13), %v1509_v12 }
  0x35   : > { %1227 = vmatpush3.bf16.msra.mxu0 %v1395_v6  ;;  %1329 = vmatpush3.bf16.msra.mxu1 %v1395_v6  ;;  %v329_v32 = vld [vmem:[#allocation2 + $0x58] sm:$0xff]  ;;  %v327_v38 = vld [vmem:[#allocation2 + $0x48] sm:$0xff]  ;;  %v324_v49 = vld [vmem:[#allocation2 + $0x30] sm:$0xff] }
  0x36   : > { %1228 = vmatprep.subr.bf16.mxu0 %v1396_v7  ;;  %1322 = vmatprep.subr.bf16.mxu1 %v1396_v7  ;;  %v332_v50 = vld [vmem:[#allocation2 + $0x70] sm:$0xff]  ;;  %v322_v51 = vld [vmem:[#allocation2 + $0x20] sm:$0xff]  ;;  %v325_v55 = vld [vmem:[#allocation2 + $0x38] sm:$0xff] }
  0x37   : > { %v330_v52 = vld [vmem:[#allocation2 + $0x60] sm:$0xff]  ;;  %v333_v56 = vld [vmem:[#allocation2 + $0x78] sm:$0xff]  ;;  %v323_v61 = vld [vmem:[#allocation2 + $0x28] sm:$0xff] }
  0x38   : > { %v331_v62 = vld [vmem:[#allocation2 + $0x68] sm:$0xff] }
  0x39   : > { %1229 = vmatpush3.bf16.msra.mxu0 %v1396_v7  ;;  %1330 = vmatpush3.bf16.msra.mxu1 %v1396_v7 }
  0x3a   : > { %1230 = vmatprep.subr.bf16.mxu0 %v1397_v8  ;;  %1323 = vmatprep.subr.bf16.mxu1 %v1397_v8 }
  0x3d   : > { %1231 = vmatpush3.bf16.msra.mxu0 %v1397_v8  ;;  %1331 = vmatpush3.bf16.msra.mxu1 %v1397_v8 }
  0x3e   : > { %1232 = vmatprep.subr.bf16.mxu0 %v1398_v13  ;;  %1324 = vmatprep.subr.bf16.mxu1 %v1398_v13 }
  0x41   : > { %1233 = vmatpush3.bf16.msra.mxu0 %v1398_v13  ;;  %1332 = vmatpush3.bf16.msra.mxu1 %v1398_v13 }
  0x42   : > { %1234 = vmatprep.subr.bf16.mxu0 %v1399_v14  ;;  %1325 = vmatprep.subr.bf16.mxu1 %v1399_v14 }
  0x45   : > { %1235 = vmatpush3.bf16.msra.mxu0 %v1399_v14  ;;  %1333 = vmatpush3.bf16.msra.mxu1 %v1399_v14 }
  0x46   : > { %1236 = vmatprep.subr.bf16.mxu0 %v1400_v15  ;;  %1326 = vmatprep.subr.bf16.mxu1 %v1400_v15 }
  0x49   : > { %1237 = vmatpush3.bf16.msra.mxu0 %v1400_v15  ;;  %1334 = vmatpush3.bf16.msra.mxu1 %v1400_v15 }
  0x4a   : > { %1238 = vmatprep.subr.bf16.mxu0 %v1401_v16  ;;  %1327 = vmatprep.subr.bf16.mxu1 %v1401_v16 }
  0x4d   : > { %1239 = vmatpush3.bf16.msra.mxu0 %v1401_v16  ;;  %1335 = vmatpush3.bf16.msra.mxu1 %v1401_v16 }
  0x50   : > { %1241 = vmatmul.mubr.bf16.vlgmr.msra.gmra.mrb[0].mxu0 %v311_v19  ;;  %1249 = vmatmul.mubr.bf16.vlgmr.msra.gmra.mrb[0].mxu1 %v315_v20 }
  0x51   : > { %1244 = vmatprep.mubr.bf16.mxu0 %v312_v21  ;;  %1252 = vmatprep.mubr.bf16.mxu1 %v316_v22 }
  0x58   : > { %1245 = vmatmul.mubr.bf16.gmra.mrb[4].mxu0 %v313_v23  ;;  %1253 = vmatmul.mubr.bf16.gmra.mrb[4].mxu1 %v317_v24 }
 0x123   : > { %v1242_v29 = vpop.f32.mrb[0].mxu0  ;;  %v1250_v30 = vpop.f32.mrb[0].mxu1 }
 0x124   : > { %v497_v33 = vadd.f32 %v1242_v29, %v320_v25  ;;  %v505_v34 = vadd.f32 %v1250_v30, %v328_v26  ;;  %v432_v35 = vpop.f32.mrb[1].mxu0  ;;  %v464_v36 = vpop.f32.mrb[1].mxu1  ;;  %v1404_v25 = vld [vmem:[%s1777_s2] sm:$0xff] (!%p1156_p13)   ;;  %v1405_v26 = vld [vmem:[%s1777_s2 + $0x8] sm:$0xff] (!%p1156_p13)  }
 0x125   : > { %v495_v39 = vadd.f32 %v432_v35, %v318_v27  ;;  %v503_v40 = vadd.f32 %v464_v36, %v326_v28  ;;  %v1243_v41 = vpop.f32.mrb[2].mxu0  ;;  %v1251_v42 = vpop.f32.mrb[2].mxu1  ;;  %1256 = vmatprep.subr.bf16.mxu0 (!%p1156_p13), %v1404_v25 }
 0x126   : > { %513 = vst [vmem:[#allocation2 + $0x10] sm:$0xff] %v497_v33  ;;  %521 = vst [vmem:[#allocation2 + $0x50] sm:$0xff] %v505_v34  ;;  %v498_v43 = vadd.f32 %v1243_v41, %v321_v31  ;;  %v506_v44 = vadd.f32 %v1251_v42, %v329_v32  ;;  %v435_v45 = vpop.f32.mrb[3].mxu0  ;;  %v467_v46 = vpop.f32.mrb[3].mxu1  ;;  %1257 = vmatpush3.bf16.msra.mxu0 (!%p1156_p13), %v1404_v25  ;;  %v1406_v31 = vld [vmem:[%s1777_s2 + $0x10] sm:$0xff] (!%p1156_p13)  }
 0x127   : > { %511 = vst [vmem:[#allocation2] sm:$0xff] %v495_v39  ;;  %519 = vst [vmem:[#allocation2 + $0x40] sm:$0xff] %v503_v40  ;;  %v496_v47 = vadd.f32 %v435_v45, %v319_v37  ;;  %v504_v48 = vadd.f32 %v467_v46, %v327_v38  ;;  %1258 = vmatprep.subr.bf16.mxu0 (!%p1156_p13), %v1405_v26  ;;  %v1407_v38 = vld [vmem:[%s1777_s2 + $0x18] sm:$0xff] (!%p1156_p13)  }
 0x128   : > { %514 = vst [vmem:[#allocation2 + $0x18] sm:$0xff] %v498_v43  ;;  %522 = vst [vmem:[#allocation2 + $0x58] sm:$0xff] %v506_v44  ;;  %v1408_v43 = vld [vmem:[%s1777_s2 + $0x20] sm:$0xff] (!%p1156_p13)  }
 0x129   : > { %512 = vst [vmem:[#allocation2 + $0x8] sm:$0xff] %v496_v47  ;;  %520 = vst [vmem:[#allocation2 + $0x48] sm:$0xff] %v504_v48 }
 0x12a   : > { %1259 = vmatpush3.bf16.msra.mxu0 (!%p1156_p13), %v1405_v26 }
 0x12b   : > { %v1246_v53 = vpop.f32.mrb[4].mxu0  ;;  %v1254_v54 = vpop.f32.mrb[4].mxu1  ;;  %530 = sbr.rel (%p1156_p13) target bundleno = 915 (0x393), region = 82  ;;  %1260 = vmatprep.subr.bf16.mxu0 (!%p1156_p13), %v1406_v31 }
 0x12c   : > { %v501_v57 = vadd.f32 %v1246_v53, %v324_v49  ;;  %v509_v58 = vadd.f32 %v1254_v54, %v332_v50  ;;  %v448_v59 = vpop.f32.mrb[5].mxu0  ;;  %v480_v60 = vpop.f32.mrb[5].mxu1  ;;  %v1409_v50 = vld [vmem:[%s1777_s2 + $0x28] sm:$0xff] (!%p1156_p13)  }
 0x12d   : > { %v499_v63 = vadd.f32 %v448_v59, %v322_v51  ;;  %v507_v0 = vadd.f32 %v480_v60, %v330_v52  ;;  %v1247_v1 = vpop.f32.mrb[6].mxu0  ;;  %v1255_v2 = vpop.f32.mrb[6].mxu1  ;;  %v1626_v9 = vld [vmem:[#allocation2 + $0x10] sm:$0xff] (!%p1156_p13)  ;;  %v1411_v59 = vld [vmem:[%s1777_s2 + $0x38] sm:$0xff] (!%p1156_p13)  }
 0x12e   : > { %517 = vst [vmem:[#allocation2 + $0x30] sm:$0xff] %v501_v57  ;;  %525 = vst [vmem:[#allocation2 + $0x70] sm:$0xff] %v509_v58  ;;  %v502_v3 = vadd.f32 %v1247_v1, %v325_v55  ;;  %v510_v4 = vadd.f32 %v1255_v2, %v333_v56  ;;  %v451_v5 = vpop.f32.mrb[7].mxu0  ;;  %v483_v6 = vpop.f32.mrb[7].mxu1  ;;  %v1628_v10 = vld [vmem:[#allocation2] sm:$0xff] (!%p1156_p13)  ;;  %v549_v13 = vmax.f32 (!%p1156_p13), %v1626_v9, 1.0  ;;  %1261 = vmatpush3.bf16.msra.mxu0 (!%p1156_p13), %v1406_v31 }
 0x12f   : > { %515 = vst [vmem:[#allocation2 + $0x20] sm:$0xff] %v499_v63  ;;  %523 = vst [vmem:[#allocation2 + $0x60] sm:$0xff] %v507_v0  ;;  %v500_v7 = vadd.f32 %v451_v5, %v323_v61  ;;  %v508_v8 = vadd.f32 %v483_v6, %v331_v62  ;;  %v1630_v11 = vld [vmem:[#allocation2 + $0x18] sm:$0xff] (!%p1156_p13)  ;;  %v547_v14 = vmax.f32 (!%p1156_p13), %v1628_v10, 1.0  ;;  %v1656_v27 = vld [vmem:[#allocation2 + $0x40] sm:$0xff] (!%p1156_p13)  ;;  %1262 = vmatprep.subr.bf16.mxu0 (!%p1156_p13), %v1407_v38 }
 0x130   : > { %518 = vst [vmem:[#allocation2 + $0x38] sm:$0xff] %v502_v3  ;;  %526 = vst [vmem:[#allocation2 + $0x78] sm:$0xff] %v510_v4  ;;  %v550_v15 = vmax.f32 (!%p1156_p13), %v1630_v11, 1.0  ;;  %v1635_v16 = vld [vmem:[#allocation2 + $0x8] sm:$0xff] (!%p1156_p13)  ;;  %1420 = vrcp.f32 (!%p1156_p13), %v549_v13  ;;  %v555_v32 = vmax.f32 (!%p1156_p13), %v1656_v27, 1.0  ;;  %v1665_v33 = vld [vmem:[#allocation2 + $0x58] sm:$0xff] (!%p1156_p13) }
 0x131   : > { %516 = vst [vmem:[#allocation2 + $0x28] sm:$0xff] %v500_v7  ;;  %524 = vst [vmem:[#allocation2 + $0x68] sm:$0xff] %v508_v8  ;;  %v548_v17 = vmax.f32 (!%p1156_p13), %v1635_v16, 1.0  ;;  %1422 = vrcp.f32 (!%p1156_p13), %v547_v14  ;;  %v1647_v23 = vld [vmem:[#allocation2 + $0x48] sm:$0xff] (!%p1156_p13)  ;;  %v1667_v35 = vld [vmem:[#allocation2 + $0x50] sm:$0xff] (!%p1156_p13)  ;;  %v558_v37 = vmax.f32 (!%p1156_p13), %v1665_v33, 1.0 }
 0x132   : > { %1424 = vrcp.f32 %v550_v15  ;;  %v556_v30 = vmax.f32 %v1647_v23, 1.0  ;;  %v557_v42 = vmax.f32 %v1667_v35, 1.0  ;;  %1263 = vmatpush3.bf16.msra.mxu0 %v1407_v38  ;;  %v1410_v56 = vld [vmem:[%s1777_s2 + $0x30] sm:$0xff]   ;;  %v1412_v2 = vld [vmem:[%s1778_s3] sm:$0xff]   ;;  %v1413_v3 = vld [vmem:[%s1778_s3 + $0x8] sm:$0xff]  }
 0x133   : > { %1426 = vrcp.f32 %v548_v17  ;;  %1264 = vmatprep.subr.bf16.mxu0 %v1408_v43  ;;  %1288 = vmatprep.subr.bf16.mxu1 %v1412_v2  ;;  %v1414_v4 = vld [vmem:[%s1778_s3 + $0x10] sm:$0xff]   ;;  %v1415_v5 = vld [vmem:[%s1778_s3 + $0x18] sm:$0xff]   ;;  %v1416_v6 = vld [vmem:[%s1778_s3 + $0x20] sm:$0xff]  }
 0x134   : > { %1289 = vmatpush3.bf16.msra.mxu1 %v1412_v2  ;;  %v1417_v7 = vld [vmem:[%s1778_s3 + $0x28] sm:$0xff]  }
 0x135   : > { %v1645_v22 = vld [vmem:[#allocation2 + $0x30] sm:$0xff]  ;;  %1290 = vmatprep.subr.bf16.mxu1 %v1413_v3 }
 0x136   : > { %v1640_v19 = vld [vmem:[#allocation2 + $0x20] sm:$0xff]  ;;  %v553_v29 = vmax.f32 %v1645_v22, 1.0  ;;  %v1688_v52 = vld [vmem:[#allocation2 + $0x70] sm:$0xff]  ;;  %1265 = vmatpush3.bf16.msra.mxu0 %v1408_v43 }
 0x137   : > { %v1642_v20 = vld [vmem:[#allocation2 + $0x38] sm:$0xff]  ;;  %v551_v24 = vmax.f32 %v1640_v19, 1.0  ;;  %v1679_v45 = vld [vmem:[#allocation2 + $0x60] sm:$0xff]  ;;  %v561_v55 = vmax.f32 %v1688_v52, 1.0  ;;  %1266 = vmatprep.subr.bf16.mxu0 %v1409_v50 }
 0x138   : > { %v1638_v18 = vld [vmem:[#allocation2 + $0x28] sm:$0xff]  ;;  %v554_v28 = vmax.f32 %v1642_v20, 1.0  ;;  %v559_v48 = vmax.f32 %v1679_v45, 1.0  ;;  %v1683_v49 = vld [vmem:[#allocation2 + $0x78] sm:$0xff]  ;;  %1291 = vmatpush3.bf16.msra.mxu1 %v1413_v3 }
 0x139   : > { %v552_v21 = vmax.f32 %v1638_v18, 1.0  ;;  %v1673_v41 = vld [vmem:[#allocation2 + $0x68] sm:$0xff]  ;;  %v562_v54 = vmax.f32 %v1683_v49, 1.0  ;;  %1292 = vmatprep.subr.bf16.mxu1 %v1414_v4 }
 0x13a   : > { %v1421_v34 = vpop.eup %1420  ;;  %v560_v47 = vmax.f32 %v1673_v41, 1.0  ;;  %1267 = vmatpush3.bf16.msra.mxu0 %v1409_v50 }
 0x13b   : > { %1428 = vrcp.f32 %v552_v21  ;;  %v1423_v36 = vpop.eup %1422  ;;  %591 = vperm.xlu1 %1403, %v1421_v34   ;;  %1268 = vmatprep.subr.bf16.mxu0 %v1410_v56 }
 0x13c   : > { %1430 = vrcp.f32 %v551_v24  ;;  %v1425_v39 = vpop.eup %1424  ;;  %581 = vperm.xlu0 %1402, %v1423_v36   ;;  %1293 = vmatpush3.bf16.msra.mxu1 %v1414_v4 }
 0x13d   : > { %1432 = vrcp.f32 %v554_v28  ;;  %v1427_v40 = vpop.eup %1426  ;;  %1294 = vmatprep.subr.bf16.mxu1 %v1415_v5 }
 0x13e   : > { %1434 = vrcp.f32 %v553_v29  ;;  %1269 = vmatpush3.bf16.msra.mxu0 %v1410_v56 }
 0x13f   : > { %1436 = vrcp.f32 %v556_v30  ;;  %596 = vperm.xlu1 %1403, %v1425_v39   ;;  %1270 = vmatprep.subr.bf16.mxu0 %v1411_v59 }
 0x140   : > { %1438 = vrcp.f32 %v555_v32  ;;  %586 = vperm.xlu0 %1402, %v1427_v40   ;;  %1295 = vmatpush3.bf16.msra.mxu1 %v1415_v5 }
 0x141   : > { %1440 = vrcp.f32 %v558_v37  ;;  %1296 = vmatprep.subr.bf16.mxu1 %v1416_v6 }
 0x142   : > { %1442 = vrcp.f32 %v557_v42  ;;  %1271 = vmatpush3.bf16.msra.mxu0 %v1411_v59 }
 0x143   : > { %1444 = vrcp.f32 %v560_v47 }
 0x144   : > { %1446 = vrcp.f32 %v559_v48  ;;  %1297 = vmatpush3.bf16.msra.mxu1 %v1416_v6 }
 0x145   : > { %v1429_v44 = vpop.eup %1428  ;;  %1448 = vrcp.f32 %v562_v54  ;;  %1298 = vmatprep.subr.bf16.mxu1 %v1417_v7 }
 0x146   : > { %v1431_v46 = vpop.eup %1430  ;;  %606 = vperm.xlu1 %1403, %v1429_v44   ;;  %1450 = vrcp.f32 %v561_v55 }
 0x147   : > { %v1433_v51 = vpop.eup %1432  ;;  %601 = vperm.xlu0 %1402, %v1431_v46  }
 0x148   : > { %v1435_v53 = vpop.eup %1434  ;;  %1299 = vmatpush3.bf16.msra.mxu1 %v1417_v7 }
 0x149   : > { %v1437_v57 = vpop.eup %1436 }
 0x14a   : > { %616 = vperm.xlu1 %1403, %v1433_v51   ;;  %v1439_v58 = vpop.eup %1438 }
 0x14b   : > { %611 = vperm.xlu0 %1402, %v1435_v53   ;;  %v1441_v60 = vpop.eup %1440 }
 0x14c   : > { %v1443_v61 = vpop.eup %1442 }
 0x14d   : > { %v1445_v62 = vpop.eup %1444 }
 0x14e   : > { %626 = vperm.xlu1 %1403, %v1437_v57   ;;  %v1447_v63 = vpop.eup %1446 }
 0x14f   : > { %621 = vperm.xlu0 %1402, %v1439_v58   ;;  %v1449_v0 = vpop.eup %1448 }
 0x150   : > { %v1451_v1 = vpop.eup %1450 }
 0x152   : > { %636 = vperm.xlu1 %1403, %v1441_v60  }
 0x153   : > { %631 = vperm.xlu0 %1402, %v1443_v61  }
 0x156   : > { %646 = vperm.xlu1 %1403, %v1445_v62  }
 0x157   : > { %641 = vperm.xlu0 %1402, %v1447_v63  }
 0x15a   : > { %656 = vperm.xlu1 %1403, %v1449_v0  }
 0x15b   : > { %651 = vperm.xlu0 %1402, %v1451_v1  }
 0x1ba   : > { %v592_v8 = vpop.permute.xlu1 %591 }
 0x1bb   : > { %v582_v12 = vpop.permute.xlu0 %581  ;;  %v661_v14 = vmul.f32 %v592_v8, %v1626_v9 }
 0x1bc   : > { %v659_v21 = vmul.f32 %v582_v12, %v1628_v10 }
 0x1be   : > { %v597_v13 = vpop.permute.xlu1 %596 }
 0x1bf   : > { %v662_v15 = vmul.f32 %v597_v13, %v1630_v11  ;;  %v587_v17 = vpop.permute.xlu0 %586 }
 0x1c0   : > { %v660_v24 = vmul.f32 %v587_v17, %v1635_v16 }
 0x1c1   : > { %v676_v25 = vpack.c.bf16 %v662_v15, %v661_v14 }
 0x1c2   : > { %v675_v28 = vpack.c.bf16 %v660_v24, %v659_v21 }
 0x1c4   : > { %1272 = vmatprep.mubr.bf16.mxu0 %v675_v28 }
 0x1c5   : > { %v607_v26 = vpop.permute.xlu1 %606  ;;  %1273 = vmatmul.mubr.bf16.vlgmr.msra.gmra.mrb[0].mxu0 %v676_v25 }
 0x1c6   : > { %v664_v29 = vmul.f32 %v607_v26, %v1638_v18  ;;  %v602_v30 = vpop.permute.xlu0 %601 }
 0x1c7   : > { %v663_v31 = vmul.f32 %v602_v30, %v1640_v19 }
 0x1c9   : > { %v677_v32 = vpack.c.bf16 %v664_v29, %v663_v31  ;;  %v617_v34 = vpop.permute.xlu1 %616 }
 0x1ca   : > { %v666_v9 = vmul.f32 %v617_v34, %v1642_v20  ;;  %v612_v11 = vpop.permute.xlu0 %611 }
 0x1cb   : > { %v665_v36 = vmul.f32 %v612_v11, %v1645_v22  ;;  %1276 = vmatprep.mubr.bf16.mxu0 %v677_v32 }
 0x1cd   : > { %v678_v10 = vpack.c.bf16 %v666_v9, %v665_v36  ;;  %v627_v16 = vpop.permute.xlu1 %626 }
 0x1ce   : > { %v668_v37 = vmul.f32 %v627_v16, %v1647_v23  ;;  %v622_v38 = vpop.permute.xlu0 %621 }
 0x1cf   : > { %v667_v18 = vmul.f32 %v622_v38, %v1656_v27  ;;  %1277 = vmatmul.mubr.bf16.gmra.mrb[4].mxu0 %v678_v10 }
 0x1d1   : > { %v679_v39 = vpack.c.bf16 %v668_v37, %v667_v18  ;;  %v637_v19 = vpop.permute.xlu1 %636 }
 0x1d2   : > { %v670_v40 = vmul.f32 %v637_v19, %v1665_v33  ;;  %v632_v42 = vpop.permute.xlu0 %631 }
 0x1d3   : > { %v669_v43 = vmul.f32 %v632_v42, %v1667_v35  ;;  %1280 = vmatprep.mubr.bf16.mxu0 %v679_v39  ;;  %v1418_v35 = vld [vmem:[%s1778_s3 + $0x30] sm:$0xff]  }
 0x1d4   : > { %1300 = vmatprep.subr.bf16.mxu1 %v1418_v35 }
 0x1d5   : > { %v680_v20 = vpack.c.bf16 %v670_v40, %v669_v43  ;;  %v647_v44 = vpop.permute.xlu1 %646  ;;  %1301 = vmatpush3.bf16.msra.mxu1 %v1418_v35 }
 0x1d6   : > { %v672_v22 = vmul.f32 %v647_v44, %v1673_v41  ;;  %v642_v46 = vpop.permute.xlu0 %641  ;;  %v1419_v41 = vld [vmem:[%s1778_s3 + $0x38] sm:$0xff]  }
 0x1d7   : > { %v671_v47 = vmul.f32 %v642_v46, %v1679_v45  ;;  %1281 = vmatmul.mubr.bf16.gmra.mrb[8].mxu0 %v680_v20  ;;  %1302 = vmatprep.subr.bf16.mxu1 %v1419_v41 }
 0x1d9   : > { %v681_v23 = vpack.c.bf16 %v672_v22, %v671_v47  ;;  %v657_v48 = vpop.permute.xlu1 %656  ;;  %1303 = vmatpush3.bf16.msra.mxu1 %v1419_v41 }
 0x1da   : > { %v674_v27 = vmul.f32 %v657_v48, %v1683_v49  ;;  %v652_v50 = vpop.permute.xlu0 %651 }
 0x1db   : > { %v673_v51 = vmul.f32 %v652_v50, %v1688_v52  ;;  %1284 = vmatprep.mubr.bf16.mxu0 %v681_v23 }
 0x1dd   : > { %v682_v33 = vpack.c.bf16 %v674_v27, %v673_v51 }
 0x1df   : > { %1285 = vmatmul.mubr.bf16.gmra.mrb[12].mxu0 %v682_v33 }
 0x298   : > { %v1274_v45 = vpop.f32.mrb[0].mxu0 }
 0x299   : > { %v781_v49 = vpop.f32.mrb[1].mxu0  ;;  %v846_v54 = vmax.f32 %v1274_v45, 0.0 }
 0x29a   : > { %v1275_v53 = vpop.f32.mrb[2].mxu0  ;;  %v844_v56 = vmax.f32 %v781_v49, 0.0 }
 0x29b   : > { %v847_v52 = vmax.f32 %v1275_v53, 0.0  ;;  %v784_v55 = vpop.f32.mrb[3].mxu0 }
 0x29c   : > { %v845_v57 = vmax.f32 %v784_v55, 0.0 }
 0x29d   : > { %v861_v58 = vpack.c.bf16 %v847_v52, %v846_v54 }
 0x29e   : > { %v860_v59 = vpack.c.bf16 %v845_v57, %v844_v56 }
 0x2a0   : > { %1304 = vmatprep.mubr.bf16.mxu1 %v860_v59 }
 0x2a1   : > { %1305 = vmatmul.mubr.bf16.vlgmr.msra.gmra.mrb[0].mxu1 %v861_v58 }
 0x2a2   : > { %v1278_v60 = vpop.f32.mrb[4].mxu0 }
 0x2a3   : > { %v797_v61 = vpop.f32.mrb[5].mxu0  ;;  %v850_v63 = vmax.f32 %v1278_v60, 0.0 }
 0x2a4   : > { %v1279_v62 = vpop.f32.mrb[6].mxu0  ;;  %v848_v2 = vmax.f32 %v797_v61, 0.0 }
 0x2a5   : > { %v851_v0 = vmax.f32 %v1279_v62, 0.0  ;;  %v800_v1 = vpop.f32.mrb[7].mxu0 }
 0x2a6   : > { %v849_v3 = vmax.f32 %v800_v1, 0.0 }
 0x2a7   : > { %v863_v4 = vpack.c.bf16 %v851_v0, %v850_v63 }
 0x2a8   : > { %v862_v5 = vpack.c.bf16 %v849_v3, %v848_v2 }
 0x2aa   : > { %v1282_v6 = vpop.f32.mrb[8].mxu0  ;;  %1308 = vmatprep.mubr.bf16.mxu1 %v862_v5 }
 0x2ab   : > { %v813_v7 = vpop.f32.mrb[9].mxu0  ;;  %1309 = vmatmul.mubr.bf16.gmra.mrb[4].mxu1 %v863_v4  ;;  %v854_v12 = vmax.f32 %v1282_v6, 0.0 }
 0x2ac   : > { %v1283_v8 = vpop.f32.mrb[10].mxu0  ;;  %v852_v15 = vmax.f32 %v813_v7, 0.0 }
 0x2ad   : > { %v855_v13 = vmax.f32 %v1283_v8, 0.0  ;;  %v816_v14 = vpop.f32.mrb[11].mxu0 }
 0x2ae   : > { %v853_v17 = vmax.f32 %v816_v14, 0.0 }
 0x2af   : > { %v865_v21 = vpack.c.bf16 %v855_v13, %v854_v12 }
 0x2b0   : > { %v864_v24 = vpack.c.bf16 %v853_v17, %v852_v15 }
 0x2b2   : > { %v1286_v25 = vpop.f32.mrb[12].mxu0  ;;  %1312 = vmatprep.mubr.bf16.mxu1 %v864_v24 }
 0x2b3   : > { %v829_v26 = vpop.f32.mrb[13].mxu0  ;;  %1313 = vmatmul.mubr.bf16.gmra.mrb[8].mxu1 %v865_v21  ;;  %v858_v29 = vmax.f32 %v1286_v25, 0.0 }
 0x2b4   : > { %v1287_v28 = vpop.f32.mrb[14].mxu0  ;;  %v856_v32 = vmax.f32 %v829_v26, 0.0 }
 0x2b5   : > { %v859_v30 = vmax.f32 %v1287_v28, 0.0  ;;  %v832_v31 = vpop.f32.mrb[15].mxu0 }
 0x2b6   : > { %v857_v34 = vmax.f32 %v832_v31, 0.0 }
 0x2b7   : > { %v867_v9 = vpack.c.bf16 %v859_v30, %v858_v29 }
 0x2b8   : > { %v866_v11 = vpack.c.bf16 %v857_v34, %v856_v32 }
 0x2ba   : > { %1316 = vmatprep.mubr.bf16.mxu1 %v866_v11 }
 0x2bb   : > { %1317 = vmatmul.mubr.bf16.gmra.mrb[12].mxu1 %v867_v9 }
 0x374   : > { %v1306_v36 = vpop.f32.mrb[0].mxu1 }
 0x375   : > { %1031 = vst [vmem:[%s1608_s7 + $0x10] sm:$0xff] %v1306_v36  ;;  %v966_v10 = vpop.f32.mrb[1].mxu1 }
 0x376   : > { %1029 = vst [vmem:[%s1608_s7] sm:$0xff] %v966_v10  ;;  %v1307_v16 = vpop.f32.mrb[2].mxu1 }
 0x377   : > { %1032 = vst [vmem:[%s1608_s7 + $0x18] sm:$0xff] %v1307_v16  ;;  %v969_v37 = vpop.f32.mrb[3].mxu1 }
 0x378   : > { %1030 = vst [vmem:[%s1608_s7 + $0x8] sm:$0xff] %v969_v37 }
 0x37e   : > { %v1310_v38 = vpop.f32.mrb[4].mxu1 }
 0x37f   : > { %1035 = vst [vmem:[%s1608_s7 + $0x30] sm:$0xff] %v1310_v38  ;;  %v982_v18 = vpop.f32.mrb[5].mxu1 }
 0x380   : > { %1033 = vst [vmem:[%s1608_s7 + $0x20] sm:$0xff] %v982_v18  ;;  %v1311_v39 = vpop.f32.mrb[6].mxu1 }
 0x381   : > { %1036 = vst [vmem:[%s1608_s7 + $0x38] sm:$0xff] %v1311_v39  ;;  %v985_v19 = vpop.f32.mrb[7].mxu1 }
 0x382   : > { %1034 = vst [vmem:[%s1608_s7 + $0x28] sm:$0xff] %v985_v19 }
 0x386   : > { %v1314_v40 = vpop.f32.mrb[8].mxu1 }
 0x387   : > { %1039 = vst [vmem:[%s1608_s7 + $0x50] sm:$0xff] %v1314_v40  ;;  %v998_v42 = vpop.f32.mrb[9].mxu1 }
 0x388   : > { %1037 = vst [vmem:[%s1608_s7 + $0x40] sm:$0xff] %v998_v42  ;;  %v1315_v43 = vpop.f32.mrb[10].mxu1 }
 0x389   : > { %1040 = vst [vmem:[%s1608_s7 + $0x58] sm:$0xff] %v1315_v43  ;;  %v1001_v20 = vpop.f32.mrb[11].mxu1 }
 0x38a   : > { %1038 = vst [vmem:[%s1608_s7 + $0x48] sm:$0xff] %v1001_v20 }
 0x38e   : > { %v1318_v44 = vpop.f32.mrb[12].mxu1 }
 0x38f   : > { %1043 = vst [vmem:[%s1608_s7 + $0x70] sm:$0xff] %v1318_v44  ;;  %v1014_v22 = vpop.f32.mrb[13].mxu1 }
 0x390   : > { %1041 = vst [vmem:[%s1608_s7 + $0x60] sm:$0xff] %v1014_v22  ;;  %v1319_v46 = vpop.f32.mrb[14].mxu1 }
 0x391   : > { %1044 = vst [vmem:[%s1608_s7 + $0x78] sm:$0xff] %v1319_v46  ;;  %v1017_v47 = vpop.f32.mrb[15].mxu1 }
 0x392   : > { %1042 = vst [vmem:[%s1608_s7 + $0x68] sm:$0xff] %v1017_v47 }
 0x393 PF: > { %s14_s21 = sadd.s32 1, %s1506_s21   ;;  %s1780_s15 = smov %s1486_s16 }
 0x394   : > { %p11_p0 = scmp.ge.s32.totalorder %s14_s21, 6   ;;  %s1781_s16 = smov %s1586_s28 }
 0x395   : > { %s1782_s17 = smov %s1498_s19  ;;  %s1783_s18 = smov %s1502_s20 }
 0x396   : > { %s1784_s19 = smov %s1787_s22  ;;  %s1785_s20 = smov %s1791_s23 }
 0x397   :  { %13 = sbr.rel (!%p11_p0) target bundleno = 4 (0x4), region = 120 }

</bundles_post_ra>
